<compile_context>
chip_gen: v7x
topology: tpu7x:2x2x1
jax: 0.10.0
libtpu: 0.0.40
codegen_flags: <defaults>
</compile_context>

<pallas_src>
import functools

import numpy as np
import jax
import jax.numpy as jnp
from jax.experimental import pallas as pl
from jax.experimental.pallas import tpu as pltpu

NUM_JOINTS_TOTAL = 24            # root + 23 body joints (SMPL)
NUM_BODY_JOINTS = 23
SMPL_PARENTS = np.array([-1, 0, 0, 0, 1, 2, 3, 4, 5, 6, 7, 8, 9, 9, 9,
                         12, 13, 14, 16, 17, 18, 19, 20, 21], dtype=np.int32)


def _round_up(x, m):
    return ((x + m - 1) // m) * m


# ----------------------------- Pallas kernels -----------------------------

def _blend_joints_kernel(blend_pose, *refs):
    """Fused shape (+pose) blend and joint regression.

    v_shaped = v_template + betas @ shapedirs               (tiled over 3*Vpad)
    J_flat  += v_shaped @ R_expanded                        (resident accumulator)
    v_out    = v_shaped [+ pose_feature @ posedirs]
    """
    if blend_pose:
        (betas_ref, sdirs_ref, pfeat_ref, pdirs_ref,
         vt_ref, reg_ref, vout_ref, j_ref) = refs
    else:
        (betas_ref, sdirs_ref, vt_ref, reg_ref, vout_ref, j_ref) = refs

    v_shaped = vt_ref[...] + jnp.dot(
        betas_ref[...], sdirs_ref[...].astype(jnp.float32),
        preferred_element_type=jnp.float32)                    # (B, TN)

    @pl.when(pl.program_id(0) == 0)
    def _init():
        j_ref[...] = jnp.zeros_like(j_ref)

    # Joints regress from v_shaped (NOT v_posed), accumulated across N tiles.
    j_ref[...] += jnp.dot(v_shaped, reg_ref[...],
                          preferred_element_type=jnp.float32)  # (B, 72)

    v_out = v_shaped
    if blend_pose:
        v_out = v_out + jnp.dot(
            pfeat_ref[...], pdirs_ref[...].astype(jnp.float32),
            preferred_element_type=jnp.float32)
    vout_ref[...] = v_out.astype(vout_ref.dtype)


def blend_and_joints(params, betas, pose_feature=None):
    B, L = betas.shape
    Vpad = params['Vpad']
    N = 3 * Vpad
    TN = 3 * params['tile_v']          # multiple of 128, divides 3*Vpad
    grid = (N // TN,)
    J3 = 3 * NUM_JOINTS_TOTAL
    blend_pose = pose_feature is not None

    args = [betas, params['shapedirs_cols']]
    in_specs = [
        pl.BlockSpec((B, L), lambda n: (0, 0)),
        pl.BlockSpec((L, TN), lambda n: (0, n)),
    ]
    flops = 2 * B * N * L
    bytes_accessed = B * L * 4 + L * N * 2
    if blend_pose:
        P = pose_feature.shape[1]
        args += [pose_feature, params['posedirs_cols']]
        in_specs += [
            pl.BlockSpec((B, P), lambda n: (0, 0)),
            pl.BlockSpec((P, TN), lambda n: (0, n)),
        ]
        flops += 2 * B * N * P
        bytes_accessed += B * P * 4 + P * N * 2
    args += [params['v_template_row'], params['joint_reg_cols']]
    in_specs += [
        pl.BlockSpec((1, TN), lambda n: (0, n)),        # un-batched template
        pl.BlockSpec((TN, J3), lambda n: (n, 0)),       # expanded J regressor
    ]
    flops += 2 * B * N * J3
    bytes_accessed += N * 4 + N * J3 * 4 + B * N * 4 + B * J3 * 4

    out_shape = (
        jax.ShapeDtypeStruct((B, N), jnp.float32),       # v_posed (flat, lane-dense)
        jax.ShapeDtypeStruct((B, J3), jnp.float32),      # joints (flat)
    )
    out_specs = (
        pl.BlockSpec((B, TN), lambda n: (0, n)),
        pl.BlockSpec((B, J3), lambda n: (0, 0)),         # resident accumulator
    )
    v_flat, j_flat = pl.pallas_call(
        functools.partial(_blend_joints_kernel, blend_pose),
        out_shape=out_shape,
        grid=grid,
        in_specs=in_specs,
        out_specs=out_specs,
        compiler_params=pltpu.CompilerParams(
            dimension_semantics=("arbitrary",)),          # N axis reduces into j
        cost_estimate=pl.CostEstimate(flops=int(flops), transcendentals=0,
                                      bytes_accessed=int(bytes_accessed)),
    )(*args)
    return v_flat, j_flat


def _skinning_kernel(w_ref, tstack_ref, v_ref, out_ref):
    # m[k*3+i, p] = sum_j T[b, j, i, k] * W[p, j]    -> one MXU matmul per tile
    m = jnp.dot(tstack_ref[0], w_ref[...], preferred_element_type=jnp.float32)  # (12, tv)
    v = v_ref[0]                                                                # (3, tv)
    out = (m[0:3, :] * v[0:1, :] +
           m[3:6, :] * v[1:2, :] +
           m[6:9, :] * v[2:3, :] +
           m[9:12, :])                                                          # (3, tv)
    out_ref[0] = out.astype(out_ref.dtype)


def skinning(lbs_weights_T, t_stack, v_posed_T, tile_v):
    """LBS skinning on a lane-dense (B, 3, Vpad) vertex layout."""
    J, Vpad = lbs_weights_T.shape
    B = v_posed_T.shape[0]
    num_tiles = Vpad // tile_v
    flops = 2 * B * Vpad * 12 * J + 7 * B * 3 * Vpad
    bytes_accessed = J * Vpad * 4 + B * 12 * J * 4 + 2 * B * 3 * Vpad * 4
    return pl.pallas_call(
        _skinning_kernel,
        out_shape=jax.ShapeDtypeStruct((B, 3, Vpad), v_posed_T.dtype),
        grid=(num_tiles, B),                              # b inner -> W tile reused
        in_specs=[
            pl.BlockSpec((J, tile_v), lambda t, b: (0, t)),        # shared weights
            pl.BlockSpec((1, 12, J), lambda t, b: (b, 0, 0)),      # stacked transforms
            pl.BlockSpec((1, 3, tile_v), lambda t, b: (b, 0, t)),  # lane-dense verts
        ],
        out_specs=pl.BlockSpec((1, 3, tile_v), lambda t, b: (b, 0, t)),
        compiler_params=pltpu.CompilerParams(
            dimension_semantics=("parallel", "parallel")),
        cost_estimate=pl.CostEstimate(flops=int(flops), transcendentals=0,
                                      bytes_accessed=int(bytes_accessed)),
    )(lbs_weights_T, t_stack, v_posed_T)


# --------------------------- plain-JAX glue -------------------------------

def batch_rodrigues(rot_vecs, eps=1e-8):
    N = rot_vecs.shape[0]
    dtype = rot_vecs.dtype
    angle = jnp.linalg.norm(rot_vecs + eps, axis=1, keepdims=True)   # (N,1)
    rot_dir = rot_vecs / angle
    cos = jnp.cos(angle)[:, None, :]                                 # (N,1,1)
    sin = jnp.sin(angle)[:, None, :]
    rx, ry, rz = rot_dir[:, 0:1], rot_dir[:, 1:2], rot_dir[:, 2:3]
    zeros = jnp.zeros((N, 1), dtype)
    K = jnp.concatenate([zeros, -rz, ry, rz, zeros, -rx, -ry, rx, zeros],
                        axis=1).reshape(N, 3, 3)
    ident = jnp.eye(3, dtype=dtype)[None]
    return ident + sin * K + (1.0 - cos) * jnp.matmul(K, K)


def batch_rigid_transform(rot_mats, joints, parents):
    B, N = joints.shape[0], joints.shape[1]
    dtype = joints.dtype
    joints4 = joints[..., None]                                      # (B,N,3,1)
    rel_joints = joints4.at[:, 1:].add(-joints4[:, parents[1:]])
    bottom = jnp.broadcast_to(jnp.array([0., 0., 0., 1.], dtype), (B, N, 1, 4))
    transforms_mat = jnp.concatenate(
        [jnp.concatenate([rot_mats, rel_joints], axis=-1), bottom], axis=-2)
    chain = [transforms_mat[:, 0]]
    for i in range(1, N):
        chain.append(jnp.matmul(chain[int(parents[i])], transforms_mat[:, i]))
    transforms = jnp.stack(chain, axis=1)                            # (B,N,4,4)
    posed_joints = transforms[:, :, :3, 3]
    joints_homogen = jnp.concatenate(
        [joints4, jnp.zeros((B, N, 1, 1), dtype)], axis=-2)          # (B,N,4,1)
    tj = jnp.matmul(transforms, joints_homogen)                      # (B,N,4,1)
    rel_transforms = transforms - jnp.pad(tj, ((0, 0), (0, 0), (0, 0), (3, 0)))
    return posed_joints, rel_transforms


def body_model_forward(params, betas, body_pose, global_orient,
                       trans=None, blend_pose=False):
    B = betas.shape[0]
    V = params['num_verts']
    Vpad = params['Vpad']

    # --- pose -> rotation matrices (tiny, plain JAX) ---
    full_pose = jnp.concatenate([global_orient, body_pose], axis=1)
    rot_mats = batch_rodrigues(full_pose.reshape(-1, 3)).reshape(B, -1, 3, 3)
    pose_feature = None
    if blend_pose:
        ident = jnp.eye(3, dtype=rot_mats.dtype)
        pose_feature = (rot_mats[:, 1:] - ident).reshape(B, -1)      # (B, 207)

    # --- fused shape(+pose) blend and joint regression (Pallas) ---
    v_flat, j_flat = blend_and_joints(params, betas, pose_feature)
    J = j_flat.reshape(B, 3, NUM_JOINTS_TOTAL).transpose(0, 2, 1)    # (B,24,3)

    # --- kinematic chain (tiny sequential, plain JAX) ---
    J_transformed, T = batch_rigid_transform(rot_mats, J, SMPL_PARENTS)

    # --- LBS skinning (Pallas, lane-dense layout) ---
    # Tstack[b, k*3+i, j] = T[b, j, i, k]
    t_stack = T[:, :, :3, :].transpose(0, 3, 2, 1).reshape(B, 12, NUM_JOINTS_TOTAL)
    v_posed_T = v_flat.reshape(B, 3, Vpad)                           # free reshape
    verts_T = skinning(params['lbs_weights_T'], t_stack, v_posed_T,
                       tile_v=params['tile_v'])                      # (B,3,Vpad)
    vertices = verts_T[:, :, :V].transpose(0, 2, 1)                  # (B,V,3)

    joints = J_transformed
    if trans is not None:
        joints = joints + trans[:, None, :]
        vertices = vertices + trans[:, None, :]
        T = T.at[:, :, 0:3, 3].add(trans[:, None, :])
    return dict(vertices=vertices, joints=joints, transformations=T,
                body_pose=body_pose, global_orient=global_orient, betas=betas)


# ------------------------- synthetic parameters ----------------------------

def make_params(key, num_verts=128, num_betas=10, max_tile_v=1024):
    V, J, P = num_verts, NUM_JOINTS_TOTAL, NUM_BODY_JOINTS * 9
    ks = jax.random.split(key, 5)
    v_template = jax.random.normal(ks[0], (V, 3), jnp.float32) * 0.5
    # dirs are stored bf16 (streamed in bf16 by the kernel); keep the f32 copies
    # bf16-rounded so the pure-JAX reference sees the exact same values.
    shapedirs = (jax.random.normal(ks[1], (V, 3, num_betas), jnp.float32)
                 * 0.03).astype(jnp.bfloat16).astype(jnp.float32)
    jr = jax.random.uniform(ks[2], (J, V), jnp.float32)
    J_regressor = jr / jr.sum(axis=1, keepdims=True)
    posedirs3 = (jax.random.normal(ks[3], (V, 3, P), jnp.float32)
                 * 0.01).astype(jnp.bfloat16).astype(jnp.float32)
    w = jax.random.uniform(ks[4], (V, J), jnp.float32)
    lbs_weights = w / w.sum(axis=1, keepdims=True)

    # --- tiling / padding metadata ---
    max_tile_v = _round_up(max_tile_v, 128)
    tile_v = min(max_tile_v, _round_up(V, 128))
    Vpad = _round_up(V, tile_v)
    pad = Vpad - V

    def pad_v(x):
        return jnp.pad(x, ((0, pad),) + ((0, 0),) * (x.ndim - 1))

    vt_p = pad_v(v_template)                                  # (Vpad, 3)
    sd_p = pad_v(shapedirs)                                   # (Vpad, 3, L)
    pd_p = pad_v(posedirs3)                                   # (Vpad, 3, P)
    w_p = pad_v(lbs_weights)                                  # (Vpad, J)

    # Expanded joint regressor: R[k*Vpad+v, k*J+j] = J_regressor[j, v]
    jr_np = np.zeros((J, Vpad), np.float32)
    jr_np[:, :V] = np.asarray(J_regressor, np.float32)
    R = np.zeros((3, Vpad, 3, J), np.float32)
    for k in range(3):
        R[k, :, k, :] = jr_np.T
    joint_reg_cols = jnp.asarray(R.reshape(3 * Vpad, 3 * J))

    return dict(
        # module-equivalent tensors (used by the pure-JAX reference)
        v_template=v_template,
        shapedirs=shapedirs,
        J_regressor=J_regressor,
        posedirs=posedirs3.reshape(V * 3, P).T,               # (P, 3V) as in torch module
        lbs_weights=lbs_weights,
        # kernel layouts (padded, lane-dense, bf16 streaming of the big dirs)
        num_verts=int(V), Vpad=int(Vpad), tile_v=int(tile_v),
        v_template_row=vt_p.T.reshape(1, 3 * Vpad),                            # f32
        shapedirs_cols=sd_p.transpose(2, 1, 0).reshape(num_betas, 3 * Vpad)
                           .astype(jnp.bfloat16),
        posedirs_cols=pd_p.transpose(2, 1, 0).reshape(P, 3 * Vpad)
                          .astype(jnp.bfloat16),
        joint_reg_cols=joint_reg_cols,                                         # f32
        lbs_weights_T=w_p.T,                                                   # (J, Vpad) f32
    )


# ----------------------------- pure-JAX reference --------------------------

def reference_forward(params, betas, body_pose, global_orient, blend_pose=False):
    HI = jax.lax.Precision.HIGHEST
    B = betas.shape[0]
    V = params['v_template'].shape[0]
    v_shaped = params['v_template'][None] + jnp.einsum(
        'bl,mkl->bmk', betas, params['shapedirs'], precision=HI)
    J = jnp.einsum('bik,ji->bjk', v_shaped, params['J_regressor'], precision=HI)
    full_pose = jnp.concatenate([global_orient, body_pose], axis=1)
    rot_mats = batch_rodrigues(full_pose.reshape(-1, 3)).reshape(B, -1, 3, 3)
    J_transformed, T = batch_rigid_transform(rot_mats, J, SMPL_PARENTS)
    v_posed = v_shaped
    if blend_pose:
        pose_feature = (rot_mats[:, 1:] - jnp.eye(3, dtype=rot_mats.dtype)).reshape(B, -1)
        v_posed = v_posed + jnp.matmul(pose_feature, params['posedirs'],
                                       precision=HI).reshape(B, V, 3)
    W = jnp.broadcast_to(params['lbs_weights'][None],
                         (B,) + params['lbs_weights'].shape)
    v_homo = jnp.concatenate(
        [v_posed, jnp.ones(v_posed.shape[:-1] + (1,), v_posed.dtype)], axis=-1)
    vertices = jnp.einsum('bpn,bnij,bpj->bpi', W, T, v_homo, precision=HI)[..., :3]
    return vertices, J_transformed, T


if __name__ == "__main__":
    key = jax.random.PRNGKey(0)
    kp, kb, kpose, kgo = jax.random.split(key, 4)
    # Small shapes; V=300 is deliberately NOT a multiple of the 128-vertex tile
    # so the padding / multi-tile (grid=(3,)) paths are exercised.
    B, V, NB = 2, 300, 10
    params = make_params(kp, num_verts=V, num_betas=NB, max_tile_v=128)

    betas = jax.random.normal(kb, (B, NB), jnp.float32)
    body_pose = jax.random.normal(kpose, (B, NUM_BODY_JOINTS * 3), jnp.float32) * 0.2
    global_orient = jax.random.normal(kgo, (B, 3), jnp.float32) * 0.2

    out = body_model_forward(params, betas, body_pose, global_orient, blend_pose=False)
    verts = jax.block_until_ready(out['vertices'])
    out_bp = body_model_forward(params, betas, body_pose, global_orient, blend_pose=True)
    verts_bp = jax.block_until_ready(out_bp['vertices'])

    ref_v, ref_j, _ = reference_forward(params, betas, body_pose, global_orient,
                                        blend_pose=False)
    ref_v_bp, _, _ = reference_forward(params, betas, body_pose, global_orient,
                                       blend_pose=True)

    np.testing.assert_allclose(np.asarray(verts), np.asarray(ref_v),
                               rtol=5e-3, atol=5e-3)
    np.testing.assert_allclose(np.asarray(out['joints']), np.asarray(ref_j),
                               rtol=5e-3, atol=5e-3)
    np.testing.assert_allclose(np.asarray(verts_bp), np.asarray(ref_v_bp),
                               rtol=5e-3, atol=5e-3)

    print("KERNEL_OK")
</pallas_src>

<mosaic_0001>
module attributes {stable_mosaic.version = 11 : i64} {
  func.func @_blend_joints_kernel(%arg0: i32, %arg1: memref<2x10xf32, #tpu.memory_space<vmem>>, %arg2: memref<10x384xbf16, #tpu.memory_space<vmem>>, %arg3: memref<1x384xf32, #tpu.memory_space<vmem>>, %arg4: memref<384x72xf32, #tpu.memory_space<vmem>>, %arg5: memref<2x384xf32, #tpu.memory_space<vmem>>, %arg6: memref<2x72xf32, #tpu.memory_space<vmem>>) attributes {dimension_semantics = [#tpu.dimension_semantics<arbitrary>], iteration_bounds = array<i64: 3>, scalar_prefetch = 0 : i64, scratch_operands = 0 : i64, tpu.core_type = #tpu.core_type<tc>, window_params = [{pipeline_mode = #tpu.pipeline_mode<synchronous>, transform_indices = @transform_0, window_bounds = array<i64: 2, 10>}, {transform_indices = @transform_1, window_bounds = array<i64: 10, 384>}, {transform_indices = @transform_2, window_bounds = array<i64: 1, 384>}, {transform_indices = @transform_3, window_bounds = array<i64: 384, 72>}, {transform_indices = @transform_4, window_bounds = array<i64: 2, 384>}, {pipeline_mode = #tpu.pipeline_mode<synchronous>, transform_indices = @transform_5, window_bounds = array<i64: 2, 72>}]} {
    %c0 = arith.constant 0 : index
    %c0_0 = arith.constant 0 : index
    %0 = vector.load %arg3[%c0, %c0_0] : memref<1x384xf32, #tpu.memory_space<vmem>>, vector<1x384xf32>
    %c0_1 = arith.constant 0 : index
    %c0_2 = arith.constant 0 : index
    %1 = vector.load %arg1[%c0_1, %c0_2] : memref<2x10xf32, #tpu.memory_space<vmem>>, vector<2x10xf32>
    %c0_3 = arith.constant 0 : index
    %c0_4 = arith.constant 0 : index
    %2 = vector.load %arg2[%c0_3, %c0_4] : memref<10x384xbf16, #tpu.memory_space<vmem>>, vector<10x384xbf16>
    %3 = arith.extf %2 : vector<10x384xbf16> to vector<10x384xf32>
    %cst = arith.constant dense<0.000000e+00> : vector<2x384xf32>
    %4 = tpu.matmul %1, %3, %cst {dimension_numbers = #tpu.dot_dimension_numbers<[1], [0], [0], [1], [0, 0, 1, 1], [], []>} : vector<2x10xf32>, vector<10x384xf32>, vector<2x384xf32> -> vector<2x384xf32>
    %5 = vector.broadcast %0 : vector<1x384xf32> to vector<2x384xf32>
    %6 = arith.addf %5, %4 : vector<2x384xf32>
    %c0_i32 = arith.constant 0 : i32
    %7 = arith.cmpi eq, %arg0, %c0_i32 : i32
    %8 = arith.extui %7 : i1 to i32
    %c0_i32_5 = arith.constant 0 : i32
    %9 = arith.cmpi ne, %8, %c0_i32_5 : i32
    scf.if %9 {
      %cst_15 = arith.constant 0.000000e+00 : f32
      %16 = vector.broadcast %cst_15 : f32 to vector<2x72xf32>
      %c0_16 = arith.constant 0 : index
      %c0_17 = arith.constant 0 : index
      %17 = vector.load %arg6[%c0_16, %c0_17] : memref<2x72xf32, #tpu.memory_space<vmem>>, vector<2x72xf32>
      tpu.vector_store %arg6[%c0_16, %c0_17], %16 {strides = array<i32>} : memref<2x72xf32, #tpu.memory_space<vmem>>, vector<2x72xf32>,
    } else {
    }
    %c0_6 = arith.constant 0 : index
    %c0_7 = arith.constant 0 : index
    %10 = vector.load %arg6[%c0_6, %c0_7] : memref<2x72xf32, #tpu.memory_space<vmem>>, vector<2x72xf32>
    %c0_8 = arith.constant 0 : index
    %c0_9 = arith.constant 0 : index
    %11 = vector.load %arg4[%c0_8, %c0_9] : memref<384x72xf32, #tpu.memory_space<vmem>>, vector<384x72xf32>
    %cst_10 = arith.constant dense<0.000000e+00> : vector<2x72xf32>
    %12 = tpu.matmul %6, %11, %cst_10 {dimension_numbers = #tpu.dot_dimension_numbers<[1], [0], [0], [1], [0, 0, 1, 1], [], []>} : vector<2x384xf32>, vector<384x72xf32>, vector<2x72xf32> -> vector<2x72xf32>
    %13 = arith.addf %10, %12 : vector<2x72xf32>
    %c0_11 = arith.constant 0 : index
    %c0_12 = arith.constant 0 : index
    %14 = vector.load %arg6[%c0_11, %c0_12] : memref<2x72xf32, #tpu.memory_space<vmem>>, vector<2x72xf32>
    tpu.vector_store %arg6[%c0_11, %c0_12], %13 {strides = array<i32>} : memref<2x72xf32, #tpu.memory_space<vmem>>, vector<2x72xf32>,
    %c0_13 = arith.constant 0 : index
    %c0_14 = arith.constant 0 : index
    %15 = vector.load %arg5[%c0_13, %c0_14] : memref<2x384xf32, #tpu.memory_space<vmem>>, vector<2x384xf32>
    tpu.vector_store %arg5[%c0_13, %c0_14], %6 {strides = array<i32>} : memref<2x384xf32, #tpu.memory_space<vmem>>, vector<2x384xf32>,
    return
  }
  func.func @transform_0(%arg0: i32) -> (i32, i32) {
    %c0_i32 = arith.constant 0 : i32
    %c0_i32_0 = arith.constant 0 : i32
    %c0_i32_1 = arith.constant 0 : i32
    return %c0_i32, %c0_i32_0 : i32, i32
  }
  func.func @transform_1(%arg0: i32) -> (i32, i32) {
    %c0_i32 = arith.constant 0 : i32
    %c0_i32_0 = arith.constant 0 : i32
    return %c0_i32, %arg0 : i32, i32
  }
  func.func @transform_2(%arg0: i32) -> (i32, i32) {
    %c0_i32 = arith.constant 0 : i32
    %c0_i32_0 = arith.constant 0 : i32
    return %c0_i32, %arg0 : i32, i32
  }
  func.func @transform_3(%arg0: i32) -> (i32, i32) {
    %c0_i32 = arith.constant 0 : i32
    %c0_i32_0 = arith.constant 0 : i32
    return %arg0, %c0_i32 : i32, i32
  }
  func.func @transform_4(%arg0: i32) -> (i32, i32) {
    %c0_i32 = arith.constant 0 : i32
    %c0_i32_0 = arith.constant 0 : i32
    return %c0_i32, %arg0 : i32, i32
  }
  func.func @transform_5(%arg0: i32) -> (i32, i32) {
    %c0_i32 = arith.constant 0 : i32
    %c0_i32_0 = arith.constant 0 : i32
    %c0_i32_1 = arith.constant 0 : i32
    return %c0_i32, %c0_i32_0 : i32, i32
  }
}

</mosaic_0001>

<bundles_post_ra>
// kernel: tpu_custom_call.1
= control target key start
LH: loop header
LB: loop body
LE: loop exit
PB: predicated region body
PF: predicated region fallthrough
CT: control target
= control target key end

     0   :  { %11 = vsyncpa [#allocation4], 0  ;;  %s1434_s0 = inlined_call_operand.vmem [shape: f32[2,10], index: 0, kind: input, shape index: {}]   ;;  %s1435_s1 = inlined_call_operand.vmem [shape: bf16[10,1152], index: 1, kind: input, shape index: {}]   ;;  %s1436_s2 = inlined_call_operand.vmem [shape: f32[1,1152], index: 2, kind: input, shape index: {}]   ;;  %s1437_s3 = inlined_call_operand.vmem [shape: f32[1152,72], index: 3, kind: input, shape index: {}]   ;;  %s1438_s4 = inlined_call_operand.hbm [shape: f32[2,1152], index: 4, kind: output, shape index: {0}]   ;;  %s1439_s5 = inlined_call_operand.hbm [shape: f32[2,72], index: 5, kind: output, shape index: {1}]  }
   0x1   :  { %13 = vsyncpa [#allocation4 + $0x1], 0 }
   0x2   :  { %14 = vsyncpa [#allocation6], 0  ;;  %s1212_s18 = smov 0   ;;  %s1214_s19 = smov 0  }
   0x3   :  { %s1216_s20 = smov 0   ;;  %s1218_s21 = smov 0  }
   0x4 LB: > { %s1233_s22 = sadd.s32 4294967295, %s1172_s21   ;;  %s832_s23 = sadd.s32 4294967294, %s1172_s21   ;;  %s1172_s21 = sphi %s1218_s21, %s1445_s21   ;;  %s1168_s20 = sphi %s1216_s20, %s1444_s20   ;;  %s1164_s19 = sphi %s1214_s19, %s1443_s19   ;;  %s1160_s18 = sphi %s1212_s18, %s1442_s18  }
   0x5   : > { %s1237_s24 = sadd.s32 1, %s1172_s21   ;;  %s48_s25 = sadd.s32 1, %s1168_s20 }
   0x6   : > { %s45_s26 = ssub.s32 %s1172_s21, %s1237_s24  ;;  %p55_p0 = scmp.ne.s32.totalorder %s1168_s20, %s1164_s19 }
   0x7   : > { %p46_p1 = scmp.eq.s32.totalorder %s45_s26, 0  ;;  %p56_p2 = scmp.eq.s32.totalorder %s1172_s21, 0 }
   0x8   : > { %p137_p3 = scmp.eq.s32.totalorder %s1233_s22, 2  ;;  %p142_p4 = scmp.ne.s32.totalorder %s1164_s19, %s1160_s18 }
   0x9   : > { %s1249_s27 = scalar_select %p46_p1, %s1168_s20, %s48_s25  }
   0xa   : > { %p57_p5 = por %p56_p2, %p55_p0  ;;  %p1253_p6 = por %p137_p3, %p55_p0 }
   0xb   : > { %p143_p7 = scmp.eq.s32.totalorder %s832_s23, 2  ;;  %p834_p9 = scmp.ge.s32.totalorder %s1172_s21, 3 }
   0xd   : > { %p1257_p8 = por %p143_p7, %p142_p4  ;;  %183 = sbr.rel (%p834_p9) target bundleno = 27 (0x1b), region = 20 }
  0x14   : > { %186 = sbr.rel (!%p57_p5) target bundleno = 27 (0x1b), region = 24  ;;  %s188_s30 = sand.u32 (%p57_p5), 1, %s1168_s20  }
  0x15   : > { %s853_s6 = smul.u32 (%p57_p5), 12, %s1172_s21 }
  0x16   : > { %s1021_s7 = smul.u32 (%p57_p5), 24, %s188_s30 }
  0x17   : > { %s193_s10 = scalar_lea.vmem (%p57_p5), %s1435_s1, %s853_s6 }
  0x18   : > { %v208_v0 = vld [vmem:[%s193_s10] sm:$0xff] (%p57_p5)  ;;  %v836_v2 = vld [vmem:[%s193_s10 + $0x8] sm:$0xf] (%p57_p5)  ;;  %s190_s11 = scalar_lea.vmem (%p57_p5), [#allocation2], %s1021_s7  ;;  %v838_v3 = vld [vmem:[%s193_s10 + $0x2c] sm:$0xf] (%p57_p5) }
  0x19   : > { %v210_v1 = vld [vmem:[%s193_s10 + $0x24] sm:$0xff] (%p57_p5)  ;;  %209 = vst [vmem:[%s190_s11] sm:$0xff] (%p57_p5), %v208_v0  ;;  %837 = vst [vmem:[%s190_s11 + $0x8] sm:$0xf] (%p57_p5), %v836_v2 }
  0x1a   : > { %211 = vst [vmem:[%s190_s11 + $0xc] sm:$0xff] (%p57_p5), %v210_v1  ;;  %839 = vst [vmem:[%s190_s11 + $0x14] sm:$0xf] (%p57_p5), %v838_v3 }
  0x1b PF: > { %p840_p10 = scmp.ge.s32.totalorder %s1172_s21, 1  ;;  %p244_p11 = scmp.lt.s32.totalorder %s1172_s21, 4 }
  0x1d   : > { %p245_p12 = pnand %p840_p10, %p244_p11 }
  0x1e   : > { %s1270_s12 = sand.u32 (!%p245_p12), 1, %s1164_s19   ;;  %s293_s13 = smul.u32 (!%p245_p12), 48, %s1233_s22  ;;  %vm316_vm0 = vcmask (!%p245_p12), 1041408   ;;  %v1174_v4 = vmov (!%p245_p12), 0.0|0.0   ;;  %v1175_v5 = vmov (!%p245_p12), 0.0   ;;  %vm1176_vm1 = vmmov (!%p245_p12), 0  }
  0x1f   : > { %248 = sbr.rel (%p245_p12) target bundleno = 523 (0x20b), region = 58  ;;  %958 = vmatprep.subr.bf16.mxu1 (!%p245_p12), %v1174_v4  ;;  %390 = vmatprep.mubr.f32.mxu0 (!%p245_p12), %v1175_v5  ;;  %vm1177_vm2 = vmmov (!%p245_p12), 1   ;;  %v301_v9 = vld [vmem:[%s1434_s0] sm:$0x3] (!%p245_p12)  ;;  %vm312_vm4 = vcmask (!%p245_p12), 80896   ;;  %v468_v10 = vlaneseq (!%p245_p12)  ;;  %p847_p1 = scmp.ne.s32.totalorder (!%p245_p12), %s1233_s22, 0 }
  0x20   : > { %s1022_s14 = smul.u32 (!%p245_p12), 24, %s1270_s12  ;;  %p294_p13 = scmp.lt.s32.totalorder (!%p245_p12), %s293_s13, 143  ;;  %914 = vmatprep.mubr.msk.f32.mxu1 (!%p245_p12), %vm1176_vm1, %v1175_v5  ;;  %vm953_vm3 = vmpackc.low (!%p245_p12), %vm316_vm0, %vm1177_vm2 }
  0x21   : > { %s1023_s15 = smul.u32 (!%p245_p12), 6, %s1270_s12  ;;  %v1286_v11 = vshrl.u32 (!%p245_p12), %v468_v10, 7 }
  0x22   : > { %s253_s16 = scalar_lea.vmem (!%p245_p12), [#allocation2], %s1022_s14  ;;  %s288_s7 = smul.u32 (!%p245_p12), 3, %s1233_s22 }
  0x23   : > { %v1076_v6 = vld [vmem:[%s253_s16 + $0x4] ss:$12 sps:$4 sm:$0x1f] (!%p245_p12)   ;;  %v1078_v7 = vld [vmem:[%s253_s16] ss:$12 sps:$4 sm:$0x1f] (!%p245_p12)  }
  0x24   : > { %v1079_v8 = vld [vmem:[%s253_s16 + $0x8] ss:$12 sps:$4 sm:$0x1f] (!%p245_p12)   ;;  %954 = vmatprep.subr.msk.bf16.mxu0 (!%p245_p12), %vm953_vm3, %v1076_v6  ;;  %p289_p0 = scmp.lt.s32.totalorder (!%p245_p12), %s288_s7, 8  ;;  %v470_v12 = vsub.s32 (!%p245_p12), 0, %v1286_v11  ;;  %v478_v13 = vsub.s32 (!%p245_p12), 2, %v1286_v11 }
  0x25   : > { %957 = vmatpush1.bf16.msk.msra.mxu0 (!%p245_p12), %vm953_vm3, %v1078_v7  ;;  %961 = vmatpush3.bf16.msk.msra.mxu1 (!%p245_p12), %vm953_vm3, %v1079_v8  ;;  %v474_v15 = vsub.s32 (!%p245_p12), 1, %v1286_v11  ;;  %s1302_s11 = scalar_lea.vmem (!%p245_p12), [#allocation3], %s1023_s15 }
  0x26   : > { %s1447_s13 = smov (!%p294_p13, %s293_s13), 143  ;;  %s1449_s7 = smov (!%p289_p0, %s288_s7), 8 }
  0x27   : > { %s841_s17 = sshll.u32 %s1447_s13, 3  ;;  %s291_s10 = scalar_lea.vmem %s1436_s2, %s1449_s7  ;;  %vm490_vm5 = vcmask (!%p847_p1), 582656   ;;  %v1178_v26 = vmov (!%p847_p1), 0.0  }
  0x28   : > { %s1280_s26 = scalar_lea.vmem %s1437_s3, %s841_s17  ;;  %844 = vmatmul.mubr.msk.f32.vlgmr.msra.gmra.mrb[0].mxu0 %vm312_vm4, %v301_v9  ;;  %915 = vmatmul.mubr.msk.f32.vlgmr.msra.gmra.mrb[0].mxu1 %vm312_vm4, %v301_v9  ;;  %v300_v14 = vld [vmem:[%s291_s10] sm:$0x7]  ;;  %491 = vst.msk [vmem:[#allocation5] sm:$0x3] (!%p847_p1), %vm490_vm5, %v1178_v26 }
  0x29   : > { %v471_v16 = vrot.slane %v300_v14, %v470_v12  ;;  %v479_v17 = vrot.slane %v300_v14, %v478_v13  ;;  %v475_v18 = vrot.slane %v300_v14, %v474_v15 }
  0xf7   : > { %489 = sbr.rel (%p847_p1) target bundleno = 254 (0xfe), region = 66 }
  0xfb   : > { %v392_v19 = vpop.f32.mrb[0].mxu0  ;;  %v463_v20 = vpop.f32.mrb[0].mxu1 }
  0xfc   : > { %v1294_v21 = vadd.f32 %v471_v16, %v392_v19  ;;  %v1296_v22 = vadd.f32 %v479_v17, %v463_v20  ;;  %v394_v23 = vpop.f32.mrb[1].mxu0  ;;  %v916_v24 = vpop.f32.mrb[1].mxu1 }
  0xfd   : > { %v1298_v25 = vadd.f32 %v475_v18, %v394_v23 }
  0xfe PF: > { %v509_v27 = vld [vmem:[%s1280_s26 + $0x80] sm:$0xff]  ;;  %v510_v28 = vld [vmem:[%s1280_s26 + $0x88] sm:$0xff]  ;;  %994 = vmatprep.subr.bf16.mxu1 %v1174_v4  ;;  %949 = vmatprep.mubr.msk.f32.mxu1 %vm1176_vm1, %v1175_v5  ;;  %v511_v36 = vld [vmem:[%s1280_s26 + $0x90] sm:$0xff]  ;;  %s854_s13 = smul.u32 96, %s1233_s22  ;;  %s720_s14 = sshll.u32 %s1302_s11, 4  ;;  %s721_s14 = int_to_ptr.vmem [resolvable:$true] %s720_s14 }
  0xff   : > { %v493_v29 = vld [vmem:[%s1280_s26] sm:$0xff]  ;;  %605 = vmatprep.mubr.f32.mxu0 %v1298_v25  ;;  %v962_v30 = vpack.c.bf16 %v510_v28, %v509_v27  ;;  %v494_v31 = vld [vmem:[%s1280_s26 + $0x8] sm:$0xff]  ;;  %v512_v37 = vld [vmem:[%s1280_s26 + $0x98] sm:$0xff]  ;;  %s706_s23 = scalar_lea.sflag [#allocation4], %s1270_s12  ;;  %s1080_s25 = scalar_lea.vmem %s721_s14, 96 }
 0x100   : > { %v525_v32 = vld [vmem:[%s1280_s26 + $0x100] sm:$0xff]  ;;  %v526_v33 = vld [vmem:[%s1280_s26 + $0x108] sm:$0xff]  ;;  %v964_v34 = vpack.c.bf16 %v494_v31, %v493_v29  ;;  %v495_v38 = vld [vmem:[%s1280_s26 + $0x10] sm:$0xff]  ;;  %v966_v39 = vpack.c.bf16 %v512_v37, %v511_v36  ;;  %s1375_s17 = scalar_lea.hbm %s1438_s4, %s854_s13  ;;  %p1081_p2 = scmp.ne.s32.totalorder %s721_s14, %s1080_s25 }
 0x101   : > { %v995_v35 = vpack.c.bf16 %v526_v33, %v525_v32  ;;  %963 = vmatprep.subr.bf16.mxu0 %v962_v30  ;;  %v496_v40 = vld [vmem:[%s1280_s26 + $0x18] sm:$0xff]  ;;  %v527_v41 = vld [vmem:[%s1280_s26 + $0x110] sm:$0xff]  ;;  %v513_v45 = vld [vmem:[%s1280_s26 + $0xa0] sm:$0xff] }
 0x102   : > { %v528_v42 = vld [vmem:[%s1280_s26 + $0x118] sm:$0xff]  ;;  %965 = vmatpush3.bf16.msra.mxu0 %v964_v34  ;;  %v968_v43 = vpack.c.bf16 %v496_v40, %v495_v38  ;;  %v514_v46 = vld [vmem:[%s1280_s26 + $0xa8] sm:$0xff]  ;;  %v497_v47 = vld [vmem:[%s1280_s26 + $0x20] sm:$0xff]  ;;  %v1179_v40 = vmov 1983009808   ;;  %p1082_p4 = pnand %p1081_p2, %p1253_p6 }
 0x103   : > { %996 = vmatpush3.bf16.msra.mxu1 %v995_v35  ;;  %v998_v44 = vpack.c.bf16 %v528_v42, %v527_v41  ;;  %967 = vmatprep.subr.bf16.mxu0 %v966_v39  ;;  %v970_v48 = vpack.c.bf16 %v514_v46, %v513_v45  ;;  %v498_v49 = vld [vmem:[%s1280_s26 + $0x28] sm:$0xff]  ;;  %v529_v50 = vld [vmem:[%s1280_s26 + $0x120] sm:$0xff]  ;;  %v515_v52 = vld [vmem:[%s1280_s26 + $0xb0] sm:$0xff]  ;;  %v689_v41 = vunpack.c.l.s4 %v1179_v40 }
 0x104   : > { %997 = vmatprep.subr.bf16.mxu1 %v1174_v4  ;;  %v530_v51 = vld [vmem:[%s1280_s26 + $0x128] sm:$0xff]  ;;  %v516_v53 = vld [vmem:[%s1280_s26 + $0xb8] sm:$0xff]  ;;  %v972_v54 = vpack.c.bf16 %v498_v49, %v497_v47  ;;  %v499_v56 = vld [vmem:[%s1280_s26 + $0x30] sm:$0xff]  ;;  %p1083_p5 = pneg %p1082_p4 }
 0x105   : > { %v1001_v55 = vpack.c.bf16 %v530_v51, %v529_v50  ;;  %v974_v57 = vpack.c.bf16 %v516_v53, %v515_v52  ;;  %v500_v58 = vld [vmem:[%s1280_s26 + $0x38] sm:$0xff]  ;;  %v531_v59 = vld [vmem:[%s1280_s26 + $0x130] sm:$0xff]  ;;  %v517_v61 = vld [vmem:[%s1280_s26 + $0xc0] sm:$0xff]  ;;  %v690_v42 = vunpack.c.0.s8 %v689_v41 }
 0x106   : > { %969 = vmatpush3.bf16.msra.mxu0 %v968_v43  ;;  %v532_v60 = vld [vmem:[%s1280_s26 + $0x138] sm:$0xff]  ;;  %v518_v62 = vld [vmem:[%s1280_s26 + $0xc8] sm:$0xff]  ;;  %v976_v63 = vpack.c.bf16 %v500_v58, %v499_v56  ;;  %v501_v1 = vld [vmem:[%s1280_s26 + $0x40] sm:$0xff]  ;;  %v687_v43 = vcombine.low %v1294_v21, %v1298_v25 }
 0x107   : > { %999 = vmatpush3.bf16.msra.mxu1 %v998_v44  ;;  %971 = vmatprep.subr.bf16.mxu0 %v970_v48  ;;  %v1004_v0 = vpack.c.bf16 %v532_v60, %v531_v59  ;;  %v978_v2 = vpack.c.bf16 %v518_v62, %v517_v61  ;;  %v502_v3 = vld [vmem:[%s1280_s26 + $0x48] sm:$0xff]  ;;  %v533_v5 = vld [vmem:[%s1280_s26 + $0x140] sm:$0xff]  ;;  %v519_v7 = vld [vmem:[%s1280_s26 + $0xd0] sm:$0xff]  ;;  %v693_v44 = vsub.s32 %v690_v42, %v1286_v11 }
 0x108   : > { %1000 = vmatprep.subr.bf16.mxu1 %v1174_v4  ;;  %v534_v6 = vld [vmem:[%s1280_s26 + $0x148] sm:$0xff]  ;;  %v520_v8 = vld [vmem:[%s1280_s26 + $0xd8] sm:$0xff]  ;;  %v980_v9 = vpack.c.bf16 %v502_v3, %v501_v1  ;;  %v503_v12 = vld [vmem:[%s1280_s26 + $0x50] sm:$0xff] }
 0x109   : > { %v1007_v10 = vpack.c.bf16 %v534_v6, %v533_v5  ;;  %v982_v13 = vpack.c.bf16 %v520_v8, %v519_v7  ;;  %v504_v14 = vld [vmem:[%s1280_s26 + $0x58] sm:$0xff]  ;;  %v535_v15 = vld [vmem:[%s1280_s26 + $0x150] sm:$0xff]  ;;  %v521_v17 = vld [vmem:[%s1280_s26 + $0xe0] sm:$0xff]  ;;  %v694_v45 = vrot.slane %v687_v43, %v693_v44  ;;  %v701_v46 = vrot.slane %v1296_v22, %v693_v44 }
 0x10a   : > { %973 = vmatpush3.bf16.msra.mxu0 %v972_v54  ;;  %v536_v16 = vld [vmem:[%s1280_s26 + $0x158] sm:$0xff]  ;;  %v522_v18 = vld [vmem:[%s1280_s26 + $0xe8] sm:$0xff]  ;;  %v984_v19 = vpack.c.bf16 %v504_v14, %v503_v12  ;;  %v505_v23 = vld [vmem:[%s1280_s26 + $0x60] sm:$0xff] }
 0x10b   : > { %1002 = vmatpush3.bf16.msra.mxu1 %v1001_v55  ;;  %975 = vmatprep.subr.bf16.mxu0 %v974_v57  ;;  %v1010_v20 = vpack.c.bf16 %v536_v16, %v535_v15  ;;  %v986_v24 = vpack.c.bf16 %v522_v18, %v521_v17  ;;  %v506_v26 = vld [vmem:[%s1280_s26 + $0x68] sm:$0xff]  ;;  %v537_v27 = vld [vmem:[%s1280_s26 + $0x160] sm:$0xff]  ;;  %v523_v29 = vld [vmem:[%s1280_s26 + $0xf0] sm:$0xff] }
 0x10c   : > { %1003 = vmatprep.subr.bf16.mxu1 %v1174_v4  ;;  %v538_v28 = vld [vmem:[%s1280_s26 + $0x168] sm:$0xff]  ;;  %v524_v30 = vld [vmem:[%s1280_s26 + $0xf8] sm:$0xff]  ;;  %v988_v31 = vpack.c.bf16 %v506_v26, %v505_v23  ;;  %v507_v33 = vld [vmem:[%s1280_s26 + $0x70] sm:$0xff] }
 0x10d   : > { %v1013_v32 = vpack.c.bf16 %v538_v28, %v537_v27  ;;  %v990_v34 = vpack.c.bf16 %v524_v30, %v523_v29  ;;  %v508_v35 = vld [vmem:[%s1280_s26 + $0x78] sm:$0xff]  ;;  %v539_v36 = vld [vmem:[%s1280_s26 + $0x170] sm:$0xff] }
 0x10e   : > { %977 = vmatpush3.bf16.msra.mxu0 %v976_v63  ;;  %v540_v37 = vld [vmem:[%s1280_s26 + $0x178] sm:$0xff]  ;;  %v992_v38 = vpack.c.bf16 %v508_v35, %v507_v33  ;;  %s1180_s26 = smov [#allocation3]  }
 0x10f   : > { %1005 = vmatpush3.bf16.msra.mxu1 %v1004_v0  ;;  %979 = vmatprep.subr.bf16.mxu0 %v978_v2  ;;  %v1016_v39 = vpack.c.bf16 %v540_v37, %v539_v36  ;;  %s1084_s30 = sshll.u32 %s1180_s26, 4  ;;  %s1085_s30 = int_to_ptr.vmem [resolvable:$false] %s1084_s30 }
 0x110   : > { %1006 = vmatprep.subr.bf16.mxu1 %v1174_v4  ;;  %s1086_s6 = scalar_lea.vmem %s1085_s30, 192  ;;  %p1087_p7 = scmp.lt.s32.totalorder %s721_s14, %s1085_s30 }
 0x111   : > { %p1088_p9 = scmp.lt.s32.totalorder %s1086_s6, %s1080_s25 }
 0x112   : > { %981 = vmatpush3.bf16.msra.mxu0 %v980_v9 }
 0x113   : > { %1008 = vmatpush3.bf16.msra.mxu1 %v1007_v10  ;;  %983 = vmatprep.subr.bf16.mxu0 %v982_v13  ;;  %p1089_p10 = por %p1088_p9, %p1087_p7 }
 0x114   : > { %1009 = vmatprep.subr.bf16.mxu1 %v1174_v4 }
 0x115   : > { %p1090_p11 = pnand %p1089_p10, %p1083_p5 }
 0x116   : > { %985 = vmatpush3.bf16.msra.mxu0 %v984_v19 }
 0x117   : > { %1011 = vmatpush3.bf16.msra.mxu1 %v1010_v20  ;;  %987 = vmatprep.subr.bf16.mxu0 %v986_v24 }
 0x118   : > { %1012 = vmatprep.subr.bf16.mxu1 %v1174_v4 }
 0x11a   : > { %989 = vmatpush3.bf16.msra.mxu0 %v988_v31 }
 0x11b   : > { %1014 = vmatpush3.bf16.msra.mxu1 %v1013_v32  ;;  %991 = vmatprep.subr.bf16.mxu0 %v990_v34 }
 0x11c   : > { %1015 = vmatprep.subr.bf16.mxu1 %v1174_v4  ;;  %v702_v4 = vcombine.low %v694_v45, %v701_v46 }
 0x11e   : > { %993 = vmatpush3.bf16.msra.mxu0 %v992_v38  ;;  %704 = vst [vmem:[%s1302_s11] sm:$0x3f] %v702_v4 }
 0x11f   : > { %1017 = vmatpush3.bf16.msra.mxu1 %v1016_v39 }
 0x121   : > { %606 = vmatmul.mubr.f32.vlgmr.msra.gmra.mrb[2].mxu0 %v1294_v21 }
 0x122   : > { %950 = vmatmul.mubr.f32.vlgmr.msra.gmra.mrb[2].mxu1 %v1296_v22 }
 0x123   : > { %1093 = shalt.err (!%p1090_p11)
}
 0x124   : > { %s1094_s12 = scalar_lea.hbm %s1375_s17, 96  ;;  %s1098_s9 = scalar_lea.hbm %s1438_s4, 288 }
 0x125   : > { %p1095_p12 = scmp.ne.s32.totalorder %s1375_s17, %s1094_s12  ;;  %p1099_p1 = scmp.lt.u32.totalorder %s1375_s17, %s1438_s4 }
 0x126   : > { %p1100_p2 = scmp.lt.u32.totalorder %s1098_s9, %s1094_s12  ;;  %p1102_p5 = scmp.lt.u32.totalorder %s1094_s12, %s1375_s17 }
 0x127   : > { %p1096_p13 = pnand %p1095_p12, %p1253_p6 }
 0x128   : > { %p1101_p4 = por %p1100_p2, %p1099_p1 }
 0x129   : > { %p1097_p0 = pneg %p1096_p13 }
 0x12a   : > { %p1103_p7 = por %p1102_p5, %p1101_p4 }
 0x12c   : > { %p1104_p9 = pnand %p1103_p7, %p1097_p0 }
 0x12e   : > { %1107 = shalt.err (!%p1104_p9)
}
 0x12f   : > { %1024 = dma.vmem_to_hbm [thread:$0]  (%p1253_p6), %s721_s14, 96, %s1375_s17, %s706_s23   ;;  %v492_v48 = vld [vmem:[#allocation5] sm:$0x3]  ;;  %vm682_vm6 = vcmask 582656  }
 0x130   : > { %s1181_s13 = smov [#allocation5]  }
 0x131   : > { %s731_s15 = sshll.u32 %s1181_s13, 4  ;;  %s732_s15 = int_to_ptr.vmem [resolvable:$true] %s731_s15 }
 0x132   : > { %s1108_s16 = scalar_lea.vmem %s732_s15, 32  ;;  %p1115_p6 = scmp.lt.s32.totalorder %s732_s15, %s732_s15 }
 0x133   : > { %p1109_p10 = scmp.ne.s32.totalorder %s732_s15, %s1108_s16  ;;  %p1116_p13 = scmp.lt.s32.totalorder %s1108_s16, %s1108_s16 }
 0x135   : > { %p1110_p11 = pnand %p1109_p10, %p137_p3  ;;  %p1117_p0 = por %p1116_p13, %p1115_p6 }
 0x137   : > { %p1111_p12 = pneg %p1110_p11 }
 0x139   : > { %p1118_p1 = pnand %p1117_p0, %p1111_p12 }
 0x1f4   : > { %v890_v11 = vpop.f32.mrb[2].mxu0 }
 0x1f5   : > { %v677_v21 = vpop.f32.mrb[2].mxu1  ;;  %v891_v22 = vpop.f32.mrb[3].mxu0 }
 0x1f6   : > { %v951_v25 = vpop.f32.mrb[3].mxu1  ;;  %v892_v47 = vadd.f32 %v891_v22, %v890_v11 }
 0x1f8   : > { %v678_v49 = vadd.f32 %v892_v47, %v677_v21 }
 0x1fa   : > { %v681_v50 = vadd.f32 %v678_v49, %v492_v48 }
 0x1fc   : > { %683 = vst.msk [vmem:[#allocation5] sm:$0x3] %vm682_vm6, %v681_v50 }
 0x1fd   : > { %1121 = shalt.err (!%p1118_p1)
}
 0x1fe   : > { %s1122_s17 = scalar_lea.hbm %s1439_s5, 32 }
 0x1ff   : > { %p1123_p2 = scmp.ne.s32.totalorder %s1439_s5, %s1122_s17  ;;  %p1128_p7 = scmp.lt.u32.totalorder %s1122_s17, %s1439_s5 }
 0x201   : > { %p1124_p4 = pnand %p1123_p2, %p137_p3 }
 0x203   : > { %p1125_p5 = pneg %p1124_p4 }
 0x205   : > { %p1130_p9 = pnand %p1128_p7, %p1125_p5 }
 0x207   : > { %1133 = shalt.err (!%p1130_p9)
}
 0x208   : > { %1026 = dma.vmem_to_hbm [thread:$0]  (%p137_p3), %s732_s15, 32, %s1439_s5, [#allocation6]  }
 0x209   : > { %1151 = dma.done.wait (%p137_p3), [#allocation6], 32  }
 0x20a   : > { %1153 = vsyncadd (%p137_p3), [#allocation6], 4294967264 }
 0x20b PF: > { %p1036_p10 = scmp.ge.s32.totalorder %s1172_s21, 2  ;;  %s747_s7 = sand.u32 1, %s1160_s18  }
 0x20c   : > { %s748_s8 = scalar_lea.sflag [#allocation4], %s747_s7 }
 0x20d   : > { %p1031_p11 = pnand %p1036_p10, %p1257_p8 }
 0x20f   : > { %1155 = dma.done.wait (!%p1031_p11), %s748_s8, 96  }
 0x210   : > { %1157 = vsyncadd (!%p1031_p11), %s748_s8, 4294967200  ;;  %p17_p12 = scmp.ge.s32.totalorder %s1237_s24, 5   ;;  %s1442_s18 = smov %s1164_s19 }
 0x211   : > { %s1443_s19 = smov %s1168_s20  ;;  %s1444_s20 = smov %s1249_s27 }
 0x212   : > { %s1445_s21 = smov %s1237_s24  ;;  %19 = sbr.rel (!%p17_p12) target bundleno = 4 (0x4), region = 126 }
 0x219   :  { %753 = vsyncpa [#allocation4], 1 }
 0x21a   :  { %755 = vsyncpa [#allocation4 + $0x1], 1 }
 0x21b   :  { %756 = vsyncpa [#allocation6], 1 }

</bundles_post_ra>
